<compile_context>
chip_gen: v6e
topology: v6e:2x2x1
jax: 0.10.0
libtpu: 0.0.40
codegen_flags: <defaults>
</compile_context>

<pallas_src>
import jax
import jax.numpy as jnp
from jax.experimental import pallas as pl
from jax.experimental.pallas import tpu as pltpu

# ---- model config (small, deterministic) -------------------------------
MAX_VOCAB_SIZE = 256       # V
HIDDEN_SIZE    = 128       # H
NUM_LAYERS     = 3
PADDING_IDX    = 0
BATCH          = 2
SEQ            = 8
TILE_N         = 8         # token tile (multiple of 8 sublanes; use 128-256 at real sizes)


# ---- Pallas kernel ------------------------------------------------------
def lm_kernel(ids_ref,      # (TN,1)   int32  token ids for this token block
              emb_w_ref,    # (V,H)    bf16   embedding table (one-hot gather source)
              enc_w_ref,    # (L,H,H)  bf16   encoder weights, pre-transposed
              w1_ref,       # (H,H)    bf16   decoder hidden weight, pre-transposed
              dec_w_ref,    # (H,V)    bf16   tied output weight, pre-transposed
              bias_ref,     # (L+2,V)  f32    packed biases: rows 0..L-1 enc_b (:H),
                            #                 row L b1 (:H), row L+1 b2 (:V)
              out_ref):     # (TN,V)   f32    log-probabilities
    tn, V = out_ref.shape
    H = emb_w_ref.shape[1]
    L = enc_w_ref.shape[0]

    # --- embedding gather via MXU one-hot matmul ---------------------------
    ids = ids_ref[...]                                        # (TN,1) int32
    vocab_iota = jax.lax.broadcasted_iota(jnp.int32, (tn, V), 1)
    onehot = (vocab_iota == ids).astype(jnp.bfloat16)         # (TN,V)
    h = jnp.dot(onehot, emb_w_ref[...],
                preferred_element_type=jnp.float32)           # (TN,H) f32

    # padding keep-mask as a single (TN,1) vreg value (no scratch, no stores)
    keep = (ids != PADDING_IDX).astype(jnp.float32)           # (TN,1)

    # --- TextSequenceEncoder stand-in --------------------------------------
    # TODO(synk): exact TextSequenceEncoder definition (likely an RNN) is not
    # provided; implemented as num_layers of (Linear -> Tanh) with the padding
    # mask zeroing padded positions; dropout is identity (eval mode).
    for l in range(L):
        h = jnp.tanh(
            jnp.dot(h.astype(jnp.bfloat16), enc_w_ref[l],
                    preferred_element_type=jnp.float32)
            + bias_ref[l:l + 1, :H])

    # zero out padded positions (broadcast multiply against (TN,1) mask)
    h = h * keep

    # --- SimpleDecoder: Linear -> Tanh -> Linear (output weight tied) ------
    h1 = jnp.tanh(
        jnp.dot(h.astype(jnp.bfloat16), w1_ref[...],
                preferred_element_type=jnp.float32)
        + bias_ref[L:L + 1, :H])
    logit = (jnp.dot(h1.astype(jnp.bfloat16), dec_w_ref[...],
                     preferred_element_type=jnp.float32)
             + bias_ref[L + 1:L + 2, :])

    # --- log_softmax over the vocab axis (f32, numerically stable) ---------
    m = jnp.max(logit, axis=-1, keepdims=True)
    z = logit - m
    lse = jnp.log(jnp.sum(jnp.exp(z), axis=-1, keepdims=True))
    out_ref[...] = z - lse


# ---- wrapper -------------------------------------------------------------
def language_model_forward(X, params):
    """X: (B, S) int32 token ids -> (B*S, V) float32 log-probabilities."""
    emb_w = params["emb_w"]                              # (V, H) f32
    V, H = emb_w.shape
    B, S = X.shape
    N = B * S
    L = params["enc_w"].shape[0]
    assert N % TILE_N == 0, "token count must be a multiple of TILE_N"

    ids = X.reshape(N, 1).astype(jnp.int32)              # (N,1) VMEM input

    # one-time weight prep: pre-transpose + cast matmul operands to bf16
    emb_w_bf = emb_w.astype(jnp.bfloat16)                              # (V,H) gather source
    enc_wt   = jnp.transpose(params["enc_w"], (0, 2, 1)).astype(jnp.bfloat16)
    w1t      = params["w1"].T.astype(jnp.bfloat16)                     # (H,H)
    dec_wt   = emb_w.T.astype(jnp.bfloat16)                            # (H,V) tied

    # pack all biases into one padded (L+2, V) f32 buffer
    bias = jnp.zeros((L + 2, V), jnp.float32)
    bias = bias.at[:L, :H].set(params["enc_b"].reshape(L, H))
    bias = bias.at[L, :H].set(params["b1"].reshape(H))
    bias = bias.at[L + 1, :].set(params["b2"].reshape(V))

    grid = (N // TILE_N,)

    def const_spec(shape):
        nd = len(shape)
        return pl.BlockSpec(shape, lambda i, _nd=nd: (0,) * _nd)

    out = pl.pallas_call(
        lm_kernel,
        out_shape=jax.ShapeDtypeStruct((N, V), jnp.float32),
        grid_spec=pltpu.PrefetchScalarGridSpec(
            num_scalar_prefetch=0,
            grid=grid,
            in_specs=[
                pl.BlockSpec((TILE_N, 1), lambda i: (i, 0)),   # ids (token-tiled)
                const_spec((V, H)),        # emb_w_bf (resident)
                const_spec((L, H, H)),     # enc_wt   (resident)
                const_spec((H, H)),        # w1t      (resident)
                const_spec((H, V)),        # dec_wt   (resident)
                const_spec((L + 2, V)),    # packed biases (resident)
            ],
            out_specs=pl.BlockSpec((TILE_N, V), lambda i: (i, 0)),
        ),
        compiler_params=pltpu.CompilerParams(
            dimension_semantics=("parallel",)),   # shard token blocks across TCs (v7x)
    )(ids, emb_w_bf, enc_wt, w1t, dec_wt, bias)
    return out


# ---- pure-JAX reference (f32) for validation ------------------------------
def reference_forward(X, params):
    V, H = params["emb_w"].shape
    ids = X.reshape(-1)
    emb = params["emb_w"][ids]                                  # (N,H)
    keep = (ids != PADDING_IDX).astype(jnp.float32)[:, None]
    h = emb
    for l in range(NUM_LAYERS):
        h = jnp.tanh(h @ params["enc_w"][l].T + params["enc_b"][l])
    h = h * keep
    h1 = jnp.tanh(h @ params["w1"].T + params["b1"])
    logit = h1 @ params["emb_w"].T + params["b2"]               # tied output weight
    return jax.nn.log_softmax(logit, axis=-1)


# ---- deterministic parameter init ----------------------------------------
def init_params(key):
    k = jax.random.split(key, 6)
    emb_w = 0.02 * jax.random.normal(k[0], (MAX_VOCAB_SIZE, HIDDEN_SIZE),
                                     dtype=jnp.float32)
    # nn.Embedding zeroes the padding_idx row
    emb_w = emb_w.at[PADDING_IDX].set(0.0)
    enc_w = 0.05 * jax.random.normal(
        k[1], (NUM_LAYERS, HIDDEN_SIZE, HIDDEN_SIZE), dtype=jnp.float32)
    enc_b = 0.01 * jax.random.normal(
        k[2], (NUM_LAYERS, 1, HIDDEN_SIZE), dtype=jnp.float32)
    w1 = 0.05 * jax.random.normal(
        k[3], (HIDDEN_SIZE, HIDDEN_SIZE), dtype=jnp.float32)
    b1 = 0.01 * jax.random.normal(k[4], (1, HIDDEN_SIZE), dtype=jnp.float32)
    b2 = 0.01 * jax.random.normal(k[5], (1, MAX_VOCAB_SIZE), dtype=jnp.float32)
    return dict(emb_w=emb_w, enc_w=enc_w, enc_b=enc_b, w1=w1, b1=b1, b2=b2)


if __name__ == "__main__":
    key = jax.random.PRNGKey(0)
    pkey, xkey = jax.random.split(key)
    params = init_params(pkey)

    # token ids in [0, V); force a few padding tokens so the mask is exercised
    X = jax.random.randint(xkey, (BATCH, SEQ), 0, MAX_VOCAB_SIZE,
                           dtype=jnp.int32)
    X = X.at[:, -2:].set(PADDING_IDX)

    log_prob = language_model_forward(X, params)
    jax.block_until_ready(log_prob)

    assert log_prob.shape == (BATCH * SEQ, MAX_VOCAB_SIZE)
    # log-softmax rows must sum to ~1 in prob space
    row_sums = jnp.sum(jnp.exp(log_prob), axis=-1)
    assert bool(jnp.all(jnp.abs(row_sums - 1.0) < 1e-3))
    # match the f32 reference within a bf16-appropriate tolerance
    ref = reference_forward(X, params)
    assert bool(jnp.max(jnp.abs(log_prob - ref)) < 2e-2)

    print("KERNEL_OK")
</pallas_src>

<mosaic_0001>
module attributes {stable_mosaic.version = 11 : i64} {
  func.func @lm_kernel(%arg0: i32, %arg1: memref<8x1xi32, #tpu.memory_space<vmem>>, %arg2: memref<256x128xbf16, #tpu.memory_space<vmem>>, %arg3: memref<3x128x128xbf16, #tpu.memory_space<vmem>>, %arg4: memref<128x128xbf16, #tpu.memory_space<vmem>>, %arg5: memref<128x256xbf16, #tpu.memory_space<vmem>>, %arg6: memref<5x256xf32, #tpu.memory_space<vmem>>, %arg7: memref<8x256xf32, #tpu.memory_space<vmem>>) attributes {dimension_semantics = [#tpu.dimension_semantics<parallel>], iteration_bounds = array<i64: 2>, scalar_prefetch = 0 : i64, scratch_operands = 0 : i64, tpu.core_type = #tpu.core_type<tc>, window_params = [{transform_indices = @transform_0, window_bounds = array<i64: 8, 1>}, {pipeline_mode = #tpu.pipeline_mode<synchronous>, transform_indices = @transform_1, window_bounds = array<i64: 256, 128>}, {pipeline_mode = #tpu.pipeline_mode<synchronous>, transform_indices = @transform_2, window_bounds = array<i64: 3, 128, 128>}, {pipeline_mode = #tpu.pipeline_mode<synchronous>, transform_indices = @transform_3, window_bounds = array<i64: 128, 128>}, {pipeline_mode = #tpu.pipeline_mode<synchronous>, transform_indices = @transform_4, window_bounds = array<i64: 128, 256>}, {pipeline_mode = #tpu.pipeline_mode<synchronous>, transform_indices = @transform_5, window_bounds = array<i64: 5, 256>}, {transform_indices = @transform_6, window_bounds = array<i64: 8, 256>}]} {
    %c0 = arith.constant 0 : index
    %c0_0 = arith.constant 0 : index
    %0 = vector.load %arg1[%c0, %c0_0] : memref<8x1xi32, #tpu.memory_space<vmem>>, vector<8x1xi32>
    %1 = tpu.iota {dimensions = array<i32: 1>} : vector<8x256xi32>
    %2 = vector.broadcast %0 : vector<8x1xi32> to vector<8x256xi32>
    %3 = arith.cmpi eq, %1, %2 : vector<8x256xi32>
    %4 = arith.extui %3 : vector<8x256xi1> to vector<8x256xi32>
    %5 = arith.sitofp %4 : vector<8x256xi32> to vector<8x256xf32>
    %6 = arith.truncf %5 : vector<8x256xf32> to vector<8x256xbf16>
    %c0_1 = arith.constant 0 : index
    %c0_2 = arith.constant 0 : index
    %7 = vector.load %arg2[%c0_1, %c0_2] : memref<256x128xbf16, #tpu.memory_space<vmem>>, vector<256x128xbf16>
    %cst = arith.constant dense<0.000000e+00> : vector<8x128xf32>
    %8 = tpu.matmul %6, %7, %cst {dimension_numbers = #tpu.dot_dimension_numbers<[1], [0], [0], [1], [0, 0, 1, 1], [], []>} : vector<8x256xbf16>, vector<256x128xbf16>, vector<8x128xf32> -> vector<8x128xf32>
    %c0_i32 = arith.constant 0 : i32
    %9 = vector.broadcast %c0_i32 : i32 to vector<8x1xi32>
    %10 = arith.cmpi ne, %0, %9 : vector<8x1xi32>
    %11 = arith.extui %10 : vector<8x1xi1> to vector<8x1xi32>
    %12 = arith.sitofp %11 : vector<8x1xi32> to vector<8x1xf32>
    %13 = arith.truncf %8 : vector<8x128xf32> to vector<8x128xbf16>
    %c0_3 = arith.constant 0 : index
    %c0_4 = arith.constant 0 : index
    %c0_5 = arith.constant 0 : index
    %14 = vector.load %arg3[%c0_3, %c0_4, %c0_5] : memref<3x128x128xbf16, #tpu.memory_space<vmem>>, vector<1x128x128xbf16>
    %15 = vector.shape_cast %14 : vector<1x128x128xbf16> to vector<128x128xbf16>
    %cst_6 = arith.constant dense<0.000000e+00> : vector<8x128xf32>
    %16 = tpu.matmul %13, %15, %cst_6 {dimension_numbers = #tpu.dot_dimension_numbers<[1], [0], [0], [1], [0, 0, 1, 1], [], []>} : vector<8x128xbf16>, vector<128x128xbf16>, vector<8x128xf32> -> vector<8x128xf32>
    %c0_7 = arith.constant 0 : index
    %c0_8 = arith.constant 0 : index
    %17 = vector.load %arg6[%c0_7, %c0_8] : memref<5x256xf32, #tpu.memory_space<vmem>>, vector<1x128xf32>
    %18 = vector.broadcast %17 : vector<1x128xf32> to vector<8x128xf32>
    %19 = arith.addf %16, %18 : vector<8x128xf32>
    %20 = math.tanh %19 : vector<8x128xf32>
    %21 = arith.truncf %20 : vector<8x128xf32> to vector<8x128xbf16>
    %c1 = arith.constant 1 : index
    %c0_9 = arith.constant 0 : index
    %c0_10 = arith.constant 0 : index
    %22 = vector.load %arg3[%c1, %c0_9, %c0_10] : memref<3x128x128xbf16, #tpu.memory_space<vmem>>, vector<1x128x128xbf16>
    %23 = vector.shape_cast %22 : vector<1x128x128xbf16> to vector<128x128xbf16>
    %cst_11 = arith.constant dense<0.000000e+00> : vector<8x128xf32>
    %24 = tpu.matmul %21, %23, %cst_11 {dimension_numbers = #tpu.dot_dimension_numbers<[1], [0], [0], [1], [0, 0, 1, 1], [], []>} : vector<8x128xbf16>, vector<128x128xbf16>, vector<8x128xf32> -> vector<8x128xf32>
    %c1_12 = arith.constant 1 : index
    %c0_13 = arith.constant 0 : index
    %25 = vector.load %arg6[%c1_12, %c0_13] : memref<5x256xf32, #tpu.memory_space<vmem>>, vector<1x128xf32>
    %26 = vector.broadcast %25 : vector<1x128xf32> to vector<8x128xf32>
    %27 = arith.addf %24, %26 : vector<8x128xf32>
    %28 = math.tanh %27 : vector<8x128xf32>
    %29 = arith.truncf %28 : vector<8x128xf32> to vector<8x128xbf16>
    %c2 = arith.constant 2 : index
    %c0_14 = arith.constant 0 : index
    %c0_15 = arith.constant 0 : index
    %30 = vector.load %arg3[%c2, %c0_14, %c0_15] : memref<3x128x128xbf16, #tpu.memory_space<vmem>>, vector<1x128x128xbf16>
    %31 = vector.shape_cast %30 : vector<1x128x128xbf16> to vector<128x128xbf16>
    %cst_16 = arith.constant dense<0.000000e+00> : vector<8x128xf32>
    %32 = tpu.matmul %29, %31, %cst_16 {dimension_numbers = #tpu.dot_dimension_numbers<[1], [0], [0], [1], [0, 0, 1, 1], [], []>} : vector<8x128xbf16>, vector<128x128xbf16>, vector<8x128xf32> -> vector<8x128xf32>
    %c2_17 = arith.constant 2 : index
    %c0_18 = arith.constant 0 : index
    %33 = vector.load %arg6[%c2_17, %c0_18] : memref<5x256xf32, #tpu.memory_space<vmem>>, vector<1x128xf32>
    %34 = vector.broadcast %33 : vector<1x128xf32> to vector<8x128xf32>
    %35 = arith.addf %32, %34 : vector<8x128xf32>
    %36 = math.tanh %35 : vector<8x128xf32>
    %37 = vector.broadcast %12 : vector<8x1xf32> to vector<8x128xf32>
    %38 = arith.mulf %36, %37 : vector<8x128xf32>
    %39 = arith.truncf %38 : vector<8x128xf32> to vector<8x128xbf16>
    %c0_19 = arith.constant 0 : index
    %c0_20 = arith.constant 0 : index
    %40 = vector.load %arg4[%c0_19, %c0_20] : memref<128x128xbf16, #tpu.memory_space<vmem>>, vector<128x128xbf16>
    %cst_21 = arith.constant dense<0.000000e+00> : vector<8x128xf32>
    %41 = tpu.matmul %39, %40, %cst_21 {dimension_numbers = #tpu.dot_dimension_numbers<[1], [0], [0], [1], [0, 0, 1, 1], [], []>} : vector<8x128xbf16>, vector<128x128xbf16>, vector<8x128xf32> -> vector<8x128xf32>
    %c3 = arith.constant 3 : index
    %c0_22 = arith.constant 0 : index
    %42 = vector.load %arg6[%c3, %c0_22] : memref<5x256xf32, #tpu.memory_space<vmem>>, vector<1x128xf32>
    %43 = vector.broadcast %42 : vector<1x128xf32> to vector<8x128xf32>
    %44 = arith.addf %41, %43 : vector<8x128xf32>
    %45 = math.tanh %44 : vector<8x128xf32>
    %46 = arith.truncf %45 : vector<8x128xf32> to vector<8x128xbf16>
    %c0_23 = arith.constant 0 : index
    %c0_24 = arith.constant 0 : index
    %47 = vector.load %arg5[%c0_23, %c0_24] : memref<128x256xbf16, #tpu.memory_space<vmem>>, vector<128x256xbf16>
    %cst_25 = arith.constant dense<0.000000e+00> : vector<8x256xf32>
    %48 = tpu.matmul %46, %47, %cst_25 {dimension_numbers = #tpu.dot_dimension_numbers<[1], [0], [0], [1], [0, 0, 1, 1], [], []>} : vector<8x128xbf16>, vector<128x256xbf16>, vector<8x256xf32> -> vector<8x256xf32>
    %c4 = arith.constant 4 : index
    %c0_26 = arith.constant 0 : index
    %49 = vector.load %arg6[%c4, %c0_26] : memref<5x256xf32, #tpu.memory_space<vmem>>, vector<1x256xf32>
    %50 = vector.broadcast %49 : vector<1x256xf32> to vector<8x256xf32>
    %51 = arith.addf %48, %50 : vector<8x256xf32>
    %cst_27 = arith.constant dense<0xFF800000> : vector<8xf32>
    %52 = vector.multi_reduction <maximumf>, %51, %cst_27 [1] : vector<8x256xf32> to vector<8xf32>
    %53 = vector.shape_cast %52 : vector<8xf32> to vector<8x1xf32>
    %54 = vector.broadcast %53 : vector<8x1xf32> to vector<8x256xf32>
    %55 = arith.subf %51, %54 : vector<8x256xf32>
    %56 = math.exp %55 : vector<8x256xf32>
    %cst_28 = arith.constant dense<0.000000e+00> : vector<8xf32>
    %57 = vector.multi_reduction <add>, %56, %cst_28 [1] : vector<8x256xf32> to vector<8xf32>
    %58 = vector.shape_cast %57 : vector<8xf32> to vector<8x1xf32>
    %59 = math.log %58 : vector<8x1xf32>
    %60 = vector.broadcast %59 : vector<8x1xf32> to vector<8x256xf32>
    %61 = arith.subf %55, %60 : vector<8x256xf32>
    %c0_29 = arith.constant 0 : index
    %c0_30 = arith.constant 0 : index
    %62 = vector.load %arg7[%c0_29, %c0_30] : memref<8x256xf32, #tpu.memory_space<vmem>>, vector<8x256xf32>
    tpu.vector_store %arg7[%c0_29, %c0_30], %61 {strides = array<i32>} : memref<8x256xf32, #tpu.memory_space<vmem>>, vector<8x256xf32>,
    return
  }
  func.func @transform_0(%arg0: i32) -> (i32, i32) {
    %c0_i32 = arith.constant 0 : i32
    %c0_i32_0 = arith.constant 0 : i32
    return %arg0, %c0_i32 : i32, i32
  }
  func.func @transform_1(%arg0: i32) -> (i32, i32) {
    %c0_i32 = arith.constant 0 : i32
    %c0_i32_0 = arith.constant 0 : i32
    %c0_i32_1 = arith.constant 0 : i32
    return %c0_i32, %c0_i32_0 : i32, i32
  }
  func.func @transform_2(%arg0: i32) -> (i32, i32, i32) {
    %c0_i32 = arith.constant 0 : i32
    %c0_i32_0 = arith.constant 0 : i32
    %c0_i32_1 = arith.constant 0 : i32
    %c0_i32_2 = arith.constant 0 : i32
    return %c0_i32, %c0_i32_0, %c0_i32_1 : i32, i32, i32
  }
  func.func @transform_3(%arg0: i32) -> (i32, i32) {
    %c0_i32 = arith.constant 0 : i32
    %c0_i32_0 = arith.constant 0 : i32
    %c0_i32_1 = arith.constant 0 : i32
    return %c0_i32, %c0_i32_0 : i32, i32
  }
  func.func @transform_4(%arg0: i32) -> (i32, i32) {
    %c0_i32 = arith.constant 0 : i32
    %c0_i32_0 = arith.constant 0 : i32
    %c0_i32_1 = arith.constant 0 : i32
    return %c0_i32, %c0_i32_0 : i32, i32
  }
  func.func @transform_5(%arg0: i32) -> (i32, i32) {
    %c0_i32 = arith.constant 0 : i32
    %c0_i32_0 = arith.constant 0 : i32
    %c0_i32_1 = arith.constant 0 : i32
    return %c0_i32, %c0_i32_0 : i32, i32
  }
  func.func @transform_6(%arg0: i32) -> (i32, i32) {
    %c0_i32 = arith.constant 0 : i32
    %c0_i32_0 = arith.constant 0 : i32
    return %arg0, %c0_i32 : i32, i32
  }
}

</mosaic_0001>

<bundles_post_ra>
// kernel: tpu_custom_call.1
= control target key start
LH: loop header
LB: loop body
LE: loop exit
PB: predicated region body
PF: predicated region fallthrough
CT: control target
= control target key end

     0   :  { %11 = vsyncpa [#allocation3], 0  ;;  %s2058_s0 = inlined_call_operand.vmem [shape: s32[16,1], index: 0, kind: input, shape index: {}]   ;;  %s2059_s1 = inlined_call_operand.hbm [shape: bf16[256,128], index: 1, kind: input, shape index: {}]   ;;  %s2060_s2 = inlined_call_operand.hbm [shape: bf16[3,128,128], index: 2, kind: input, shape index: {}]   ;;  %s2061_s3 = inlined_call_operand.hbm [shape: bf16[128,128], index: 3, kind: input, shape index: {}]   ;;  %s2062_s4 = inlined_call_operand.hbm [shape: bf16[128,256], index: 4, kind: input, shape index: {}]   ;;  %s2063_s5 = inlined_call_operand.vmem [shape: f32[5,256], index: 5, kind: input, shape index: {}]   ;;  %s2064_s6 = inlined_call_operand.hbm [shape: f32[16,256], index: 6, kind: output, shape index: {}]  }
   0x1   :  { %12 = vsyncpa [#allocation6], 0 }
   0x2   :  { %13 = vsyncpa [#allocation9], 0 }
   0x3   :  { %14 = vsyncpa [#allocation4], 0 }
   0x4   :  { %16 = vsyncpa [#allocation4 + $0x1], 0  ;;  %s1844_s21 = smov 0   ;;  %s1846_s22 = smov 0  }
   0x5   :  { %s1848_s23 = smov 0   ;;  %s1850_s24 = smov 0  }
   0x6 LB: > { %s1865_s25 = sadd.s32 4294967295, %s1794_s24   ;;  %s1213_s26 = sadd.s32 4294967294, %s1794_s24   ;;  %s1794_s24 = sphi %s1850_s24, %s2082_s24   ;;  %s1790_s23 = sphi %s1848_s23, %s2081_s23   ;;  %s1786_s22 = sphi %s1846_s22, %s2080_s22   ;;  %s1782_s21 = sphi %s1844_s21, %s2079_s21  }
   0x7   : > { %s1869_s27 = sadd.s32 1, %s1794_s24   ;;  %s160_s28 = sadd.s32 1, %s1790_s23 }
   0x8   : > { %s157_s29 = ssub.s32 %s1794_s24, %s1869_s27  ;;  %p170_p0 = scmp.ne.s32.totalorder %s1790_s23, %s1786_s22 }
   0x9   : > { %p158_p1 = scmp.eq.s32.totalorder %s157_s29, 0  ;;  %p171_p2 = scmp.eq.s32.totalorder %s1865_s25, 1 }
   0xa   : > { %p176_p3 = scmp.ne.s32.totalorder %s1786_s22, %s1782_s21  ;;  %p177_p4 = scmp.eq.s32.totalorder %s1213_s26, 1 }
   0xb   : > { %s1880_s30 = scalar_select %p158_p1, %s1790_s23, %s160_s28  }
   0xc   : > { %p1882_p5 = por %p171_p2, %p170_p0  ;;  %p1886_p6 = por %p177_p4, %p176_p3 }
   0xd   : > { %p1214_p7 = scmp.ge.s32.totalorder %s1794_s24, 1  ;;  %p184_p8 = scmp.lt.s32.totalorder %s1794_s24, 3 }
   0xe   : > { %s2067_s7 = scalar_select %p1882_p5, 1, 0 }
   0xf   : > { %s2068_s8 = scalar_select %p1886_p6, 1, 0 }
  0x10   : > { %p2065_p9 = scmp.eq.s32.totalorder %s1865_s25, 0  ;;  %p1893_p10 = pnand %p1214_p7, %p184_p8 }
  0x11   : > { %s1796_s10 = smov [#allocation5]   ;;  %s1797_s13 = smov [#allocation2]  }
  0x12   : > { %p1461_p11 = pneg %p1893_p10  ;;  %s209_s11 = sshll.u32 %s1796_s10, 4  ;;  %s210_s11 = int_to_ptr.vmem [resolvable:$true] %s209_s11 }
  0x13   : > { %s196_s14 = sshll.u32 %s1797_s13, 4  ;;  %s1798_s15 = smov [#allocation7]   ;;  %s197_s14 = int_to_ptr.vmem [resolvable:$true] %s196_s14 }
  0x14   : > { %p1901_p12 = pnand %p2065_p9, %p1461_p11  ;;  %s222_s16 = sshll.u32 %s1798_s15, 4  ;;  %s223_s16 = int_to_ptr.vmem [resolvable:$true] %s222_s16 }
  0x15   : > { %s1629_s17 = scalar_lea.vmem %s210_s11, 3072  ;;  %p1637_p3 = scmp.lt.s32.totalorder %s210_s11, %s210_s11 }
  0x16   : > { %p1620_p13 = pneg %p1901_p12  ;;  %p1630_p0 = scmp.ne.s32.totalorder %s210_s11, %s1629_s17 }
  0x17   : > { %p1638_p4 = scmp.lt.s32.totalorder %s1629_s17, %s1629_s17 }
  0x18   : > { %p1632_p1 = pnand %p1630_p0, %p1620_p13 }
  0x19   : > { %p1639_p7 = por %p1638_p4, %p1637_p3 }
  0x1a   : > { %p1633_p2 = pneg %p1632_p1 }
  0x1c   : > { %p1640_p8 = pnand %p1639_p7, %p1633_p2 }
  0x1e   : > { %1643 = shalt.err (!%p1640_p8)
}
  0x1f   : > { %s1799_s18 = smov 64   ;;  %s1800_s19 = smov 4  }
  0x20   : > { %1467 = dma.hbm_to_vmem [thread:$0]  (!%p1901_p12), %s2060_s2, 3072, %s210_s11, [#allocation6], %s1799_s18, %s1799_s18, %s1800_s19  }
  0x21   : > { %s1655_s28 = scalar_lea.vmem %s197_s14, 2048  ;;  %p1663_p9 = scmp.lt.s32.totalorder %s197_s14, %s197_s14 }
  0x22   : > { %p1656_p11 = scmp.ne.s32.totalorder %s197_s14, %s1655_s28  ;;  %p1664_p6 = scmp.lt.s32.totalorder %s1655_s28, %s1655_s28 }
  0x24   : > { %p1658_p0 = pnand %p1656_p11, %p1620_p13  ;;  %p1665_p3 = por %p1664_p6, %p1663_p9 }
  0x26   : > { %p1659_p1 = pneg %p1658_p0 }
  0x28   : > { %p1666_p2 = pnand %p1665_p3, %p1659_p1 }
  0x2a   : > { %1669 = shalt.err (!%p1666_p2)
}
  0x2b   : > { %1464 = dma.hbm_to_vmem [thread:$0]  (!%p1901_p12), %s2059_s1, 2048, %s197_s14, [#allocation3], %s1799_s18, %s1799_s18, %s1800_s19  }
  0x2c   : > { %s1681_s11 = scalar_lea.vmem %s223_s16, 1024  ;;  %p1689_p11 = scmp.lt.s32.totalorder %s223_s16, %s223_s16 }
  0x2d   : > { %p1682_p4 = scmp.ne.s32.totalorder %s223_s16, %s1681_s11  ;;  %p1690_p0 = scmp.lt.s32.totalorder %s1681_s11, %s1681_s11 }
  0x2f   : > { %p1684_p7 = pnand %p1682_p4, %p1620_p13  ;;  %p1691_p5 = por %p1690_p0, %p1689_p11 }
  0x31   : > { %p1685_p8 = pneg %p1684_p7 }
  0x33   : > { %p1692_p6 = pnand %p1691_p5, %p1685_p8 }
  0x35   : > { %1695 = shalt.err (!%p1692_p6)
}
  0x36   : > { %1470 = dma.hbm_to_vmem [thread:$0]  (!%p1901_p12), %s2061_s3, 1024, %s223_s16, [#allocation6], %s1799_s18, %s1799_s18, %s1800_s19  }
  0x37   : > { %s1801_s14 = smov [#allocation8]  }
  0x38   : > { %s235_s17 = sshll.u32 %s1801_s14, 4  ;;  %s236_s17 = int_to_ptr.vmem [resolvable:$true] %s235_s17 }
  0x39   : > { %s1707_s20 = scalar_lea.vmem %s236_s17, 2048  ;;  %p1715_p2 = scmp.lt.s32.totalorder %s236_s17, %s236_s17 }
  0x3a   : > { %p1708_p9 = scmp.ne.s32.totalorder %s236_s17, %s1707_s20  ;;  %p1716_p4 = scmp.lt.s32.totalorder %s1707_s20, %s1707_s20 }
  0x3c   : > { %p1710_p1 = pnand %p1708_p9, %p1620_p13  ;;  %p1717_p5 = por %p1716_p4, %p1715_p2 }
  0x3e   : > { %p1711_p3 = pneg %p1710_p1 }
  0x40   : > { %p1718_p7 = pnand %p1717_p5, %p1711_p3 }
  0x42   : > { %1721 = shalt.err (!%p1718_p7)
}
  0x43   : > { %s1802_s26 = smov 128   ;;  %s1803_s28 = smov 8  }
  0x44   : > { %1473 = dma.hbm_to_vmem [thread:$0]  (!%p1901_p12), %s2062_s4, 2048, %s236_s17, [#allocation9], %s1802_s26, %s1802_s26, %s1803_s28  }
  0x45   : > { %261 = sbr.rel (%p1893_p10) target bundleno = 1789 (0x6fd), region = 44  ;;  %p2071_p8 = scmp.eq.s32.totalorder (!%p1893_p10), %s1865_s25, 0 }
  0x4a   : > { %1765 = dma.done.wait (%p2071_p8), [#allocation3], 2048   ;;  %p2072_p13 = pmov %p2071_p8 }
  0x4b   : > { %p2073_p11 = pmov %p2071_p8 }
  0x4c   : > { %1767 = vsyncadd (%p2072_p13), [#allocation3], 4294965248 }
  0x4d   : > { %1769 = dma.done.wait (%p2073_p11), [#allocation6], 4096   ;;  %p2074_p0 = pmov %p2071_p8 }
  0x4f   : > { %1771 = vsyncadd (%p2074_p0), [#allocation6], 4294963200  ;;  %p2075_p6 = pmov %p2074_p0 }
  0x50   : > { %p2076_p12 = pmov %p2074_p0 }
  0x51   : > { %1773 = dma.done.wait (%p2075_p6), [#allocation9], 2048  }
  0x52   : > { %1775 = vsyncadd (%p2076_p12), [#allocation9], 4294965248  ;;  %p302_p10 = scmp.lt.s32.totalorder %s1865_s25, 1  ;;  %v1804_v0 = vmov 0   ;;  %v1805_v1 = vmov 0.0   ;;  %v1532_v3 = vld [vmem:[#allocation2 + $0x78] sm:$0xff]   ;;  %v308_v26 = vlaneseq }
  0x53   : > { %1531 = vset.pattern.permute.xlu0 %v1804_v0  ;;  %1363 = vmatprep.subr.bf16.mxu1 %v1805_v1  ;;  %v1533_v5 = vld [vmem:[#allocation2 + $0x38] sm:$0xff]   ;;  %v1534_v6 = vld [vmem:[#allocation2 + $0x70] sm:$0xff]   ;;  %v1536_v8 = vld [vmem:[#allocation2 + $0x68] sm:$0xff]   ;;  %v1806_v30 = vmov 1.0|1.0   ;;  %vm1807_vm5 = vmmov 0  }
  0x54   : > { %s303_s9 = scalar_select %p302_p10, %s1865_s25, 1  ;;  %1305 = vmatprep.subr.bf16.mxu0 %v1532_v3  ;;  %v1535_v7 = vld [vmem:[#allocation2 + $0x30] sm:$0xff]   ;;  %v1537_v9 = vld [vmem:[#allocation2 + $0x28] sm:$0xff]   ;;  %v1538_v10 = vld [vmem:[#allocation2 + $0x60] sm:$0xff]   ;;  %v309_v27 = vand.u32 127, %v308_v26  ;;  %1379 = vmatprep.mubr.msk.bf16.mxu1 %vm1807_vm5, %v1805_v1 }
  0x55   : > { %1306 = vmatpush3.bf16.msra.mxu0 %v1533_v5  ;;  %v1539_v11 = vld [vmem:[#allocation2 + $0x20] sm:$0xff]   ;;  %v1540_v12 = vld [vmem:[#allocation2 + $0x58] sm:$0xff]   ;;  %v1542_v14 = vld [vmem:[#allocation2 + $0x50] sm:$0xff]   ;;  %s1304_s18 = sshll.u32 %s1865_s25, 8  ;;  %p2077_p1 = scmp.ne.s32.totalorder %s2067_s7, 0 }
  0x56   : > { %s1226_s12 = sshll.u32 %s303_s9, 3  ;;  %1307 = vmatprep.subr.bf16.mxu0 %v1534_v6  ;;  %v1541_v13 = vld [vmem:[#allocation2 + $0x18] sm:$0xff]   ;;  %v1549_v16 = vld [vmem:[#allocation5 + $0x30] sm:$0xff]   ;;  %v1544_v18 = vld [vmem:[#allocation2 + $0x48] sm:$0xff]   ;;  %v310_v28 = vadd.s32 128, %v309_v27  ;;  %s299_s9 = sand.u32 1, %s1786_s22  }
  0x57   : > { %s305_s10 = scalar_lea.vmem %s2058_s0, %s1226_s12  ;;  %v1548_v15 = vld [vmem:[#allocation5 + $0x38] sm:$0xff]   ;;  %v1543_v17 = vld [vmem:[#allocation2 + $0x10] sm:$0xff]   ;;  %v1545_v19 = vld [vmem:[#allocation2 + $0x8] sm:$0xff]   ;;  %s1225_s12 = sshll.u32 %s299_s9, 4 }
  0x58   : > { %v307_v2 = vld [vmem:[%s305_s10] sm:$0xff]  ;;  %1364 = vmatpush3.bf16.msra.mxu1 %v1548_v15  ;;  %v1550_v20 = vld [vmem:[#allocation5 + $0x28] sm:$0xff]   ;;  %v1552_v24 = vld [vmem:[#allocation5 + $0x18] sm:$0xff]   ;;  %s301_s19 = scalar_lea.vmem [#allocation10], %s1225_s12  ;;  %s2023_s15 = scalar_lea.hbm %s2064_s6, %s1304_s18 }
  0x59   : > { %312 = vperm.xlu0 %1531, %v307_v2   ;;  %vm490_vm0 = vcmp.ne.s32.totalorder %v307_v2, 0  ;;  %1308 = vmatpush3.bf16.msra.mxu0 %v1535_v7  ;;  %v1546_v21 = vld [vmem:[#allocation2 + $0x40] sm:$0xff]   ;;  %v1553_v25 = vld [vmem:[#allocation5 + $0x10] sm:$0xff]   ;;  %v1554_v31 = vld [vmem:[#allocation5 + $0x8] sm:$0xff]   ;;  %s1113_s10 = sshll.u32 %s301_s19, 4  ;;  %s1099_s14 = scalar_lea.sflag [#allocation4], %s299_s9  ;;  %s1114_s10 = int_to_ptr.vmem [resolvable:$true] %s1113_s10 }
  0x5a   : > { %v1249_v4 = vsel %vm490_vm0, 1.0, %v1805_v1  ;;  %1309 = vmatprep.subr.bf16.mxu0 %v1536_v8  ;;  %1365 = vmatprep.subr.bf16.mxu1 %v1805_v1  ;;  %v1551_v22 = vld [vmem:[#allocation5 + $0x20] sm:$0xff]   ;;  %v1556_v33 = vld [vmem:[#allocation5 + $0x78] sm:$0xff]   ;;  %v1557_v34 = vld [vmem:[#allocation5 + $0x70] sm:$0xff]   ;;  %s1722_s17 = scalar_lea.vmem %s1114_s10, 256  ;;  %s1808_s25 = smov [#allocation10]  }
  0x5b   : > { %v1547_v23 = vld [vmem:[#allocation2] sm:$0xff]   ;;  %v1558_v35 = vld [vmem:[#allocation5 + $0x68] sm:$0xff]   ;;  %v1560_v43 = vld [vmem:[#allocation5 + $0x58] sm:$0xff]   ;;  %p1723_p9 = scmp.ne.s32.totalorder %s1114_s10, %s1722_s17  ;;  %s1726_s20 = sshll.u32 %s1808_s25, 4  ;;  %s1727_s20 = int_to_ptr.vmem [resolvable:$false] %s1726_s20 }
  0x5c   : > { %1366 = vmatpush3.bf16.msra.mxu1 %v1549_v16  ;;  %v1555_v32 = vld [vmem:[#allocation5] sm:$0xff]   ;;  %v1561_v44 = vld [vmem:[#allocation5 + $0x50] sm:$0xff]   ;;  %v1562_v45 = vld [vmem:[#allocation5 + $0x48] sm:$0xff]   ;;  %s1728_s26 = scalar_lea.vmem %s1727_s20, 512  ;;  %p1729_p4 = scmp.lt.s32.totalorder %s1114_s10, %s1727_s20 }
  0x5d   : > { %818 = vperm.xlu0 %1531, %v1249_v4   ;;  %1310 = vmatpush3.bf16.msra.mxu0 %v1537_v9  ;;  %v1559_v42 = vld [vmem:[#allocation5 + $0x60] sm:$0xff]   ;;  %v1564_v47 = vld [vmem:[#allocation5 + $0xb8] sm:$0xff]   ;;  %v1565_v48 = vld [vmem:[#allocation5 + $0xb0] sm:$0xff]   ;;  %p1724_p3 = pnand %p1723_p9, %p2077_p1  ;;  %p1730_p5 = scmp.lt.s32.totalorder %s1728_s26, %s1722_s17 }
  0x5e   : > { %1311 = vmatprep.subr.bf16.mxu0 %v1538_v10  ;;  %1367 = vmatprep.subr.bf16.mxu1 %v1805_v1  ;;  %v1563_v46 = vld [vmem:[#allocation5 + $0x40] sm:$0xff]   ;;  %v1566_v49 = vld [vmem:[#allocation5 + $0xa8] sm:$0xff]   ;;  %v1568_v59 = vld [vmem:[#allocation5 + $0x98] sm:$0xff]  }
  0x5f   : > { %v510_v50 = vld [vmem:[%s2063_s5] ss:$0 sm:$0xff]  ;;  %v1569_v60 = vld [vmem:[#allocation5 + $0x90] sm:$0xff]   ;;  %v1570_v61 = vld [vmem:[#allocation5 + $0x88] sm:$0xff]   ;;  %p1725_p2 = pneg %p1724_p3  ;;  %p1731_p7 = por %p1730_p5, %p1729_p4 }
  0x60   : > { %1368 = vmatpush3.bf16.msra.mxu1 %v1550_v20  ;;  %v1567_v58 = vld [vmem:[#allocation5 + $0xa0] sm:$0xff]   ;;  %v1572_v63 = vld [vmem:[#allocation7 + $0x38] sm:$0xff]   ;;  %v1573_v2 = vld [vmem:[#allocation7 + $0x30] sm:$0xff]  }
  0x61   : > { %1312 = vmatpush3.bf16.msra.mxu0 %v1539_v11  ;;  %1369 = vmatprep.subr.bf16.mxu1 %v1805_v1  ;;  %v1571_v62 = vld [vmem:[#allocation5 + $0x80] sm:$0xff]   ;;  %v1574_v3 = vld [vmem:[#allocation7 + $0x28] sm:$0xff]   ;;  %v1588_v20 = vld [vmem:[#allocation8 + $0x54] ss:$8 sps:$4 sm:$0xff]   ;;  %p1732_p8 = pnand %p1731_p7, %p1725_p2 }
  0x62   : > { %1313 = vmatprep.subr.bf16.mxu0 %v1540_v12  ;;  %v618_v4 = vld [vmem:[%s2063_s5 + $0x1] ss:$0 sm:$0xff]  ;;  %v1578_v15 = vld [vmem:[#allocation7 + $0x8] sm:$0xff]  }
  0x63   : > { %v1575_v12 = vld [vmem:[#allocation7 + $0x20] sm:$0xff]  }
  0x64   : > { %1370 = vmatpush3.bf16.msra.mxu1 %v1551_v22  ;;  %v1579_v16 = vld [vmem:[#allocation7] sm:$0xff]  }
  0x65   : > { %1314 = vmatpush3.bf16.msra.mxu0 %v1541_v13  ;;  %1371 = vmatprep.subr.bf16.mxu1 %v1805_v1  ;;  %v1576_v13 = vld [vmem:[#allocation7 + $0x18] sm:$0xff]   ;;  %v1591_v22 = vld [vmem:[#allocation8 + $0x44] ss:$8 sps:$4 sm:$0xff]  }
  0x66   : > { %1315 = vmatprep.subr.bf16.mxu0 %v1542_v14  ;;  %v1577_v14 = vld [vmem:[#allocation7 + $0x10] sm:$0xff]  }
  0x68   : > { %1372 = vmatpush3.bf16.msra.mxu1 %v1552_v24 }
  0x69   : > { %1316 = vmatpush3.bf16.msra.mxu0 %v1543_v17  ;;  %1373 = vmatprep.subr.bf16.mxu1 %v1805_v1  ;;  %v1580_v17 = vld [vmem:[#allocation8 + $0x70] ss:$8 sps:$4 sm:$0xff]  }
  0x6a   : > { %1317 = vmatprep.subr.bf16.mxu0 %v1544_v18  ;;  %v1585_v18 = vld [vmem:[#allocation8 + $0x64] ss:$8 sps:$4 sm:$0xff]  }
  0x6c   : > { %1374 = vmatpush3.bf16.msra.mxu1 %v1553_v25 }
  0x6d   : > { %1318 = vmatpush3.bf16.msra.mxu0 %v1545_v19  ;;  %1375 = vmatprep.subr.bf16.mxu1 %v1805_v1  ;;  %v1583_v19 = vld [vmem:[#allocation8 + $0x60] ss:$8 sps:$4 sm:$0xff]  }
  0x6e   : > { %1319 = vmatprep.subr.bf16.mxu0 %v1546_v21  ;;  %v1586_v21 = vld [vmem:[#allocation8 + $0x50] ss:$8 sps:$4 sm:$0xff]  }
  0x70   : > { %1376 = vmatpush3.bf16.msra.mxu1 %v1554_v31 }
  0x71   : > { %1320 = vmatpush3.bf16.msra.mxu0 %v1547_v23  ;;  %1377 = vmatprep.subr.bf16.mxu1 %v1805_v1  ;;  %v1589_v23 = vld [vmem:[#allocation8 + $0x40] ss:$8 sps:$4 sm:$0xff]  }
  0x72   : > { %1383 = vmatprep.subr.bf16.mxu0 %v1805_v1 }
  0x74   : > { %1378 = vmatpush3.bf16.msra.mxu1 %v1555_v32 }
  0x75   : > { %1403 = vmatprep.subr.bf16.mxu1 %v1805_v1 }
  0xd4   : > { %v313_v29 = vpop.permute.xlu0 %312 }
  0xd5   : > { %vm314_vm1 = vcmp.eq.s32.totalorder %v309_v27, %v313_v29  ;;  %vm315_vm2 = vcmp.eq.s32.totalorder %v310_v28, %v313_v29 }
  0xd6   : > { %vm1247_vm3 = vmpackc.low %vm314_vm1, %vm314_vm1 }
  0xd7   : > { %vm1245_vm4 = vmpackc.low %vm315_vm2, %vm315_vm2 }
  0xd8   : > { %1246 = vmatprep.mubr.msk.bf16.mxu0 %vm1245_vm4, %v1806_v30  ;;  %v819_v31 = vpop.permute.xlu0 %818 }
  0xd9   : > { %1248 = vmatmul.mubr.msk.bf16.vlgmr.msra.gmra.mxu0 %vm1247_vm3, %v1806_v30 }
  0xda   : > { %1399 = vmatprep.mubr.msk.bf16.mxu0 %vm1807_vm5, %v1805_v1  ;;  %1384 = vmatpush3.bf16.msra.mxu0 %v1556_v33 }
  0xdb   : > { %1385 = vmatprep.subr.bf16.mxu0 %v1805_v1 }
  0xde   : > { %1386 = vmatpush3.bf16.msra.mxu0 %v1557_v34  ;;  %v1594_v34 = vld [vmem:[#allocation8 + $0x34] ss:$8 sps:$4 sm:$0xff]  }
  0xdf   : > { %1387 = vmatprep.subr.bf16.mxu0 %v1805_v1 }
  0xe2   : > { %1388 = vmatpush3.bf16.msra.mxu0 %v1558_v35  ;;  %v1592_v35 = vld [vmem:[#allocation8 + $0x30] ss:$8 sps:$4 sm:$0xff]  }
  0xe3   : > { %1389 = vmatprep.subr.bf16.mxu0 %v1805_v1 }
  0xe6   : > { %1390 = vmatpush3.bf16.msra.mxu0 %v1559_v42  ;;  %v839_v42 = vld [vmem:[%s2063_s5 + $0x3] ss:$0 sm:$0xff] }
  0xe7   : > { %1391 = vmatprep.subr.bf16.mxu0 %v1805_v1 }
  0xea   : > { %1392 = vmatpush3.bf16.msra.mxu0 %v1560_v43 }
  0xeb   : > { %1393 = vmatprep.subr.bf16.mxu0 %v1805_v1 }
  0xee   : > { %1394 = vmatpush3.bf16.msra.mxu0 %v1561_v44 }
  0xef   : > { %1395 = vmatprep.subr.bf16.mxu0 %v1805_v1 }
  0xf2   : > { %1396 = vmatpush3.bf16.msra.mxu0 %v1562_v45 }
  0xf3   : > { %1397 = vmatprep.subr.bf16.mxu0 %v1805_v1 }
  0xf6   : > { %1398 = vmatpush3.bf16.msra.mxu0 %v1563_v46 }
  0xf7   : > { %1423 = vmatprep.subr.bf16.mxu0 %v1805_v1 }
 0x199   : > { %v1321_v36 = vpop.f32.mrf.mxu0 }
 0x19b   : > { %v1322_v37 = vpop.f32.mrf.mxu0 }
 0x19c   : > { %v1323_v38 = vadd.f32 %v1322_v37, %v1321_v36  ;;  %v1597_v36 = vld [vmem:[#allocation8 + $0x24] ss:$8 sps:$4 sm:$0xff]   ;;  %v1595_v37 = vld [vmem:[#allocation8 + $0x20] ss:$8 sps:$4 sm:$0xff]  }
 0x19d   : > { %v1324_v39 = vpop.f32.mrf.mxu0 }
 0x19e   : > { %v493_v40 = vpack.c.bf16 %v1323_v38, %v1323_v38  ;;  %v1600_v38 = vld [vmem:[#allocation8 + $0x14] ss:$8 sps:$4 sm:$0xff]   ;;  %v1598_v39 = vld [vmem:[#allocation8 + $0x10] ss:$8 sps:$4 sm:$0xff]  }
 0x19f   : > { %v1325_v41 = vpop.f32.mrf.mxu0 }
 0x1a0   : > { %1380 = vmatmul.mubr.bf16.vlgmr.msra.gmra.mxu1 %v493_v40  ;;  %v1603_v40 = vld [vmem:[#allocation8 + $0x4] ss:$8 sps:$4 sm:$0xff]   ;;  %v1601_v41 = vld [vmem:[#allocation8] ss:$8 sps:$4 sm:$0xff]  }
 0x1a1   : > { %1419 = vmatprep.mubr.msk.bf16.mxu1 %vm1807_vm5, %v1805_v1  ;;  %1404 = vmatpush3.bf16.msra.mxu1 %v1564_v47 }
 0x1a2   : > { %1405 = vmatprep.subr.bf16.mxu1 %v1805_v1 }
 0x1a5   : > { %1406 = vmatpush3.bf16.msra.mxu1 %v1565_v48 }
 0x1a6   : > { %1407 = vmatprep.subr.bf16.mxu1 %v1805_v1 }
 0x1a9   : > { %1408 = vmatpush3.bf16.msra.mxu1 %v1566_v49 }
 0x1aa   : > { %1409 = vmatprep.subr.bf16.mxu1 %v1805_v1 }
 0x1ad   : > { %1410 = vmatpush3.bf16.msra.mxu1 %v1567_v58 }
 0x1ae   : > { %1411 = vmatprep.subr.bf16.mxu1 %v1805_v1 }
 0x1b1   : > { %1412 = vmatpush3.bf16.msra.mxu1 %v1568_v59 }
 0x1b2   : > { %1413 = vmatprep.subr.bf16.mxu1 %v1805_v1 }
 0x1b5   : > { %1414 = vmatpush3.bf16.msra.mxu1 %v1569_v60 }
 0x1b6   : > { %1415 = vmatprep.subr.bf16.mxu1 %v1805_v1 }
 0x1b9   : > { %1416 = vmatpush3.bf16.msra.mxu1 %v1570_v61 }
 0x1ba   : > { %1417 = vmatprep.subr.bf16.mxu1 %v1805_v1 }
 0x1bd   : > { %1418 = vmatpush3.bf16.msra.mxu1 %v1571_v62 }
 0x260   : > { %v593_v51 = vpop.f32.mrf.mxu1 }
 0x261   : > { %v594_v52 = vadd.f32 %v593_v51, %v510_v50  ;;  %v950_v50 = vshrl.u32 %v308_v26, 7 }
 0x262   : > { %v1381_v53 = vpop.f32.mrf.mxu1 }
 0x263   : > { %1604 = vtanh.f32 %v594_v52  ;;  %v951_v51 = vsub.s32 0, %v950_v50  ;;  %v955_v52 = vsub.s32 1, %v950_v50  ;;  %v1282_v53 = vld [vmem:[%s2063_s5 + $0x4] ss:$8 sm:$0x3] }
 0x264   : > { %v596_v54 = vpop.f32.mrf.mxu1 }
 0x265   : > { %v952_v54 = vrot.slane %v1282_v53, %v951_v51 }
 0x266   : > { %v1382_v55 = vpop.f32.mrf.mxu1 }
 0x267   : > { %v956_v55 = vrot.slane %v1282_v53, %v955_v52 }
 0x270   : > { %v1605_v56 = vpop.eup %1604 }
 0x271   : > { %v600_v57 = vpack.c.bf16 %v1605_v56, %v1605_v56 }
 0x273   : > { %1400 = vmatmul.mubr.bf16.vlgmr.msra.gmra.mxu0 %v600_v57 }
 0x274   : > { %1439 = vmatprep.mubr.msk.bf16.mxu0 %vm1807_vm5, %v1805_v1  ;;  %1424 = vmatpush3.bf16.msra.mxu0 %v1572_v63 }
 0x275   : > { %1425 = vmatprep.subr.bf16.mxu0 %v1805_v1 }
 0x278   : > { %1426 = vmatpush3.bf16.msra.mxu0 %v1573_v2 }
 0x279   : > { %1427 = vmatprep.subr.bf16.mxu0 %v1805_v1 }
 0x27c   : > { %1428 = vmatpush3.bf16.msra.mxu0 %v1574_v3 }
 0x27d   : > { %1429 = vmatprep.subr.bf16.mxu0 %v1805_v1 }
 0x280   : > { %1430 = vmatpush3.bf16.msra.mxu0 %v1575_v12 }
 0x281   : > { %1431 = vmatprep.subr.bf16.mxu0 %v1805_v1 }
 0x284   : > { %1432 = vmatpush3.bf16.msra.mxu0 %v1576_v13 }
 0x285   : > { %1433 = vmatprep.subr.bf16.mxu0 %v1805_v1 }
 0x288   : > { %1434 = vmatpush3.bf16.msra.mxu0 %v1577_v14 }
 0x289   : > { %1435 = vmatprep.subr.bf16.mxu0 %v1805_v1 }
 0x28c   : > { %1436 = vmatpush3.bf16.msra.mxu0 %v1578_v15 }
 0x28d   : > { %1437 = vmatprep.subr.bf16.mxu0 %v1805_v1  ;;  %v726_v1 = vld [vmem:[%s2063_s5 + $0x2] ss:$0 sm:$0xff] }
 0x290   : > { %1438 = vmatpush3.bf16.msra.mxu0 %v1579_v16 }
 0x333   : > { %v701_v5 = vpop.f32.mrf.mxu0 }
 0x334   : > { %v702_v6 = vadd.f32 %v701_v5, %v618_v4 }
 0x335   : > { %v1401_v7 = vpop.f32.mrf.mxu0 }
 0x336   : > { %1606 = vtanh.f32 %v702_v6 }
 0x337   : > { %v704_v8 = vpop.f32.mrf.mxu0 }
 0x339   : > { %v1402_v9 = vpop.f32.mrf.mxu0 }
 0x343   : > { %v1607_v10 = vpop.eup %1606 }
 0x344   : > { %v708_v11 = vpack.c.bf16 %v1607_v10, %v1607_v10 }
 0x346   : > { %1420 = vmatmul.mubr.bf16.vlgmr.msra.gmra.mxu1 %v708_v11 }
 0x347   : > { %1071 = vmatprep.mubr.bf16.mxu1 %v1804_v0  ;;  %v1582_v0 = vld [vmem:[#allocation8 + $0x74] ss:$8 sps:$4 sm:$0xff]  }
 0x348   : > { %1039 = vmatprep.subr.bf16.mxu1 %v1582_v0 }
 0x349   : > { %1040 = vmatpush1.bf16.msra.mxu1 %v1580_v17 }
 0x34a   : > { %1041 = vmatprep.subr.bf16.mxu1 %v1585_v18 }
 0x34d   : > { %1042 = vmatpush1.bf16.msra.mxu1 %v1583_v19 }
 0x34e   : > { %1043 = vmatprep.subr.bf16.mxu1 %v1588_v20 }
 0x351   : > { %1044 = vmatpush1.bf16.msra.mxu1 %v1586_v21 }
 0x352   : > { %1045 = vmatprep.subr.bf16.mxu1 %v1591_v22 }
 0x355   : > { %1046 = vmatpush1.bf16.msra.mxu1 %v1589_v23 }
 0x356   : > { %1047 = vmatprep.subr.bf16.mxu1 %v1594_v34 }
 0x359   : > { %1048 = vmatpush1.bf16.msra.mxu1 %v1592_v35 }
 0x35a   : > { %1049 = vmatprep.subr.bf16.mxu1 %v1597_v36 }
 0x35d   : > { %1050 = vmatpush1.bf16.msra.mxu1 %v1595_v37 }
 0x35e   : > { %1051 = vmatprep.subr.bf16.mxu1 %v1600_v38 }
 0x361   : > { %1052 = vmatpush1.bf16.msra.mxu1 %v1598_v39 }
 0x362   : > { %1053 = vmatprep.subr.bf16.mxu1 %v1603_v40 }
 0x365   : > { %1054 = vmatpush1.bf16.msra.mxu1 %v1601_v41 }
 0x406   : > { %v809_v24 = vpop.f32.mrf.mxu1 }
 0x407   : > { %v810_v25 = vadd.f32 %v809_v24, %v726_v1 }
 0x408   : > { %v1421_v27 = vpop.f32.mrf.mxu1 }
 0x409   : > { %1608 = vtanh.f32 %v810_v25 }
 0x40a   : > { %v812_v28 = vpop.f32.mrf.mxu1 }
 0x40c   : > { %v1422_v29 = vpop.f32.mrf.mxu1 }
 0x416   : > { %v1609_v30 = vpop.eup %1608 }
 0x417   : > { %v821_v32 = vmul.f32 %v1609_v30, %v819_v31 }
 0x419   : > { %v822_v33 = vpack.c.bf16 %v821_v32, %v821_v32 }
 0x41b   : > { %1440 = vmatmul.mubr.bf16.vlgmr.msra.gmra.mxu0 %v822_v33 }
 0x4db   : > { %v922_v43 = vpop.f32.mrf.mxu0 }
 0x4dc   : > { %v923_v44 = vadd.f32 %v922_v43, %v839_v42 }
 0x4dd   : > { %v1441_v45 = vpop.f32.mrf.mxu0 }
 0x4de   : > { %1610 = vtanh.f32 %v923_v44 }
 0x4df   : > { %v925_v46 = vpop.f32.mrf.mxu0 }
 0x4e1   : > { %v1442_v47 = vpop.f32.mrf.mxu0 }
 0x4eb   : > { %v1611_v48 = vpop.eup %1610 }
 0x4ec   : > { %v929_v49 = vpack.c.bf16 %v1611_v48, %v1611_v48 }
 0x4ee   : > { %1072 = vmatmul.mubr.bf16.vlgmr.msra.gmra.mxu1 %v929_v49 }
 0x5ae   : > { %v1073_v56 = vpop.f32.mrf.mxu1 }
 0x5af   : > { %v1074_v58 = vadd.f32 %v1073_v56, %v952_v54 }
 0x5b0   : > { %v1075_v57 = vpop.f32.mrf.mxu1 }
 0x5b1   : > { %v1076_v59 = vadd.f32 %v1075_v57, %v956_v55 }
 0x5b2   : > { %v1077_v60 = vpop.f32.mrf.mxu1 }
 0x5b3   : > { %v1080_v61 = vmax.f32 %v1074_v58, %v1076_v59 }
 0x5b4   : > { %v1078_v62 = vpop.f32.mrf.mxu1 }
 0x5b5   : > { %1081 = vmax.xlane.f32.xlu1 %v1080_v61 }
 0x63e   : > { %v1082_v63 = vpop.xlane.xlu1 %1081 }
 0x63f   : > { %v1083_v26 = vsub.f32 %v1074_v58, %v1082_v63  ;;  %v1084_v2 = vsub.f32 %v1076_v59, %v1082_v63 }
 0x641   : > { %v1085_v3 = vmul.f32 1.442695, %v1083_v26  ;;  %v1087_v4 = vmul.f32 1.442695, %v1084_v2 }
 0x643   : > { %1612 = vpow2.f32 %v1085_v3 }
 0x644   : > { %1614 = vpow2.f32 %v1087_v4 }
 0x650   : > { %v1613_v5 = vpop.eup %1612 }
 0x651   : > { %v1615_v6 = vpop.eup %1614 }
 0x652   : > { %v1089_v7 = vadd.f32 %v1615_v6, %v1613_v5 }
 0x654   : > { %1090 = vadd.xlane.f32.xlu1 %v1089_v7 }
 0x6dd   : > { %v1091_v8 = vpop.xlane.xlu1 %1090 }
 0x6de   : > { %1616 = vlog2.f32 %v1091_v8 }
 0x6eb   : > { %v1617_v9 = vpop.eup %1616 }
 0x6ec   : > { %v1093_v10 = vmul.f32 0.6931472, %v1617_v9 }
 0x6ee   : > { %v1094_v11 = vsub.f32 %v1083_v26, %v1093_v10  ;;  %v1095_v12 = vsub.f32 %v1084_v2, %v1093_v10 }
 0x6f0   : > { %1096 = vst [vmem:[%s301_s19] sm:$0xff] %v1094_v11  ;;  %1097 = vst [vmem:[%s301_s19 + $0x8] sm:$0xff] %v1095_v12 }
 0x6f1   : > { %1735 = shalt.err (!%p1732_p8)
}
 0x6f2   : > { %s1736_s28 = scalar_lea.hbm %s2023_s15, 256  ;;  %s1740_s9 = scalar_lea.hbm %s2064_s6, 512 }
 0x6f3   : > { %p1737_p13 = scmp.ne.s32.totalorder %s2023_s15, %s1736_s28  ;;  %p1741_p6 = scmp.lt.s32.totalorder %s2023_s15, %s2064_s6 }
 0x6f4   : > { %p1742_p12 = scmp.lt.s32.totalorder %s1740_s9, %s1736_s28 }
 0x6f5   : > { %p1738_p11 = pnand %p1737_p13, %p2077_p1 }
 0x6f6   : > { %p1743_p10 = por %p1742_p12, %p1741_p6 }
 0x6f7   : > { %p1739_p0 = pneg %p1738_p11 }
 0x6f9   : > { %p1744_p9 = pnand %p1743_p10, %p1739_p0 }
 0x6fb   : > { %1747 = shalt.err (!%p1744_p9)
}
 0x6fc   : > { %1459 = dma.vmem_to_hbm [thread:$0]  (%p2077_p1), %s1114_s10, 256, %s2023_s15, %s1099_s14  }
 0x6fd PF: > { %p1486_p3 = scmp.ge.s32.totalorder %s1794_s24, 2  ;;  %s1125_s19 = sand.u32 1, %s1782_s21  }
 0x6fe   : > { %p2078_p2 = scmp.ne.s32.totalorder %s2068_s8, 0  ;;  %s1126_s11 = scalar_lea.sflag [#allocation4], %s1125_s19 }
 0x700   : > { %p1475_p4 = pnand %p1486_p3, %p2078_p2 }
 0x702   : > { %p1476_p5 = pneg %p1475_p4 }
 0x704   : > { %1777 = dma.done.wait (%p1476_p5), %s1126_s11, 256  }
 0x705   : > { %1779 = vsyncadd (%p1476_p5), %s1126_s11, 4294967040  ;;  %p19_p7 = scmp.ge.s32.totalorder %s1869_s27, 4   ;;  %s2079_s21 = smov %s1786_s22 }
 0x706   : > { %s2080_s22 = smov %s1790_s23  ;;  %s2081_s23 = smov %s1880_s30 }
 0x707   : > { %s2082_s24 = smov %s1869_s27  ;;  %21 = sbr.rel (!%p19_p7) target bundleno = 6 (0x6), region = 99 }
 0x70c   :  { %1131 = vsyncpa [#allocation3], 1 }
 0x70d   :  { %1133 = vsyncpa [#allocation3 + $0x1], 1 }
 0x70e   :  { %1134 = vsyncpa [#allocation6], 1 }
 0x70f   :  { %1135 = vsyncpa [#allocation9], 1 }
 0x710   :  { %1136 = vsyncpa [#allocation4], 1 }
 0x711   :  { %1138 = vsyncpa [#allocation4 + $0x1], 1 }

</bundles_post_ra>
